<compile_context>
chip_gen: v6e
topology: v6e:2x2x1
jax: 0.10.0
libtpu: 0.0.40
codegen_flags: <defaults>
</compile_context>

<pallas_src>
import functools

import jax
import jax.numpy as jnp
from jax import lax
from jax.experimental import pallas as pl
from jax.experimental.pallas import tpu as pltpu

ALPHA = 0.05            # matches BCEBlurWithLogitsLoss(alpha=0.05)
_LANE = 128
_SUB = 8
_MAX_TILE_ROWS = 8192   # 8192 * 128 * 4 B = 4 MiB per f32 input block


def _bce_blur_kernel(pred_ref, true_ref, out_ref, acc_ref, *,
                     alpha, rows_valid, tile_rows, steps_per_shard):
    """Accumulate sum(BCE-with-logits * alpha_factor) into an (8,128) vreg acc."""
    c = pl.program_id(0)            # shard (parallel axis; 2 TCs on v7x)
    i = pl.program_id(1)            # step within shard (arbitrary / reduction axis)

    @pl.when(i == 0)
    def _init():
        acc_ref[...] = jnp.zeros_like(acc_ref)

    x = pred_ref[...].astype(jnp.float32)
    y = true_ref[...].astype(jnp.float32)

    # Numerically-stable BCE with logits (reduction='none'):
    #   bce = max(x, 0) - x*y + log1p(exp(-|x|))
    e = jnp.exp(-jnp.abs(x))
    bce = jnp.maximum(x, 0.0) - x * y + jnp.log1p(e)

    # sigmoid via exact tanh identity: avoids divide + compare + select (VALU trim).
    p = 0.5 + 0.5 * jnp.tanh(0.5 * x)

    dx = p - y
    alpha_factor = 1.0 - jnp.exp((dx - 1.0) / (alpha + 0.0001))
    loss = bce * alpha_factor

    g = tile_rows // _SUB
    block_row0 = (c * steps_per_shard + i) * tile_rows
    is_full = block_row0 + tile_rows <= rows_valid

    # Fully-valid blocks: plain vreg-tree partial sum (no mask work).
    @pl.when(is_full)
    def _acc_full():
        acc_ref[...] += loss.reshape(g, _SUB, _LANE).sum(axis=0)

    # Edge / duplicated blocks: mask rows past the valid range (keep jnp.where so
    # NaN/Inf from unspecified out-of-bounds data never propagates).
    @pl.when(jnp.logical_not(is_full))
    def _acc_masked():
        row = block_row0 + lax.broadcasted_iota(jnp.int32, (tile_rows, _LANE), 0)
        masked = jnp.where(row < rows_valid, loss, 0.0)
        acc_ref[...] += masked.reshape(g, _SUB, _LANE).sum(axis=0)

    # Emit this shard's partial sum (lane-dense (8,128) store) on its last step.
    @pl.when(i == pl.num_programs(1) - 1)
    def _emit():
        out_ref[0] = acc_ref[...]


def bce_blur_with_logits_loss(pred, true, alpha=ALPHA, max_tile_rows=_MAX_TILE_ROWS):
    """Pallas TPU implementation of BCEBlurWithLogitsLoss.forward (scalar mean)."""
    assert pred.shape == true.shape
    assert max_tile_rows % _SUB == 0
    n = pred.size
    assert n > 0

    pred_flat = pred.reshape(-1)
    true_flat = true.reshape(-1)

    # Kernel handles the leading multiple-of-(8*128) elements; the small tail
    # (<= 1023 elements) is added by a pure-jnp epilogue (no jnp.pad round trip).
    n_kernel = (n // (_SUB * _LANE)) * (_SUB * _LANE)
    rows = n_kernel // _LANE                       # multiple of 8

    total = jnp.float32(0.0)

    if rows > 0:
        tile_rows = rows if rows <= max_tile_rows else max_tile_rows
        steps_total = pl.cdiv(rows, tile_rows)
        num_shards = 1 if steps_total == 1 else 2
        spc = pl.cdiv(steps_total, num_shards)    # steps per shard

        pred_2d = pred_flat[:n_kernel].reshape(rows, _LANE)
        true_2d = true_flat[:n_kernel].reshape(rows, _LANE)

        def in_map(c, i):
            # Clamp so a shard's trailing phantom step re-reads the last real
            # block (its contribution is fully masked out in-kernel).
            return (jnp.minimum(c * spc + i, steps_total - 1), 0)

        in_spec = pl.BlockSpec((tile_rows, _LANE), in_map)
        out_spec = pl.BlockSpec((1, _SUB, _LANE), lambda c, i: (c, 0, 0))

        in_bytes = (pred.dtype.itemsize + true.dtype.itemsize) * n_kernel
        cost = pl.CostEstimate(
            flops=16 * n_kernel,
            transcendentals=4 * n_kernel,
            bytes_accessed=in_bytes + num_shards * _SUB * _LANE * 4,
        )

        parts = pl.pallas_call(
            functools.partial(_bce_blur_kernel, alpha=alpha, rows_valid=rows,
                              tile_rows=tile_rows, steps_per_shard=spc),
            out_shape=jax.ShapeDtypeStruct((num_shards, _SUB, _LANE), jnp.float32),
            grid_spec=pltpu.PrefetchScalarGridSpec(
                num_scalar_prefetch=0,
                grid=(num_shards, spc),
                in_specs=[in_spec, in_spec],
                out_specs=out_spec,
                scratch_shapes=[pltpu.VMEM((_SUB, _LANE), jnp.float32)],
            ),
            compiler_params=pltpu.CompilerParams(
                dimension_semantics=("parallel", "arbitrary"),
                vmem_limit_bytes=32 * 1024 * 1024),
            cost_estimate=cost,
        )(pred_2d, true_2d)

        total = total + jnp.sum(parts)

    if n_kernel != n:
        # Tiny ragged tail (< 1024 elements): plain jnp, negligible cost.
        total = total + jnp.sum(_loss_elems(pred_flat[n_kernel:],
                                            true_flat[n_kernel:], alpha))

    return (total / n).astype(pred.dtype)


def _loss_elems(x, y, alpha):
    """Elementwise BCEBlur loss (pure jnp) — used for the ragged tail epilogue."""
    x = x.astype(jnp.float32)
    y = y.astype(jnp.float32)
    bce = jnp.maximum(x, 0.0) - x * y + jnp.log1p(jnp.exp(-jnp.abs(x)))
    p = jax.nn.sigmoid(x)
    alpha_factor = 1.0 - jnp.exp((p - y - 1.0) / (alpha + 0.0001))
    return bce * alpha_factor


def _reference(pred, true, alpha=ALPHA):
    return jnp.mean(_loss_elems(pred, true, alpha))


if __name__ == "__main__":
    key = jax.random.PRNGKey(0)
    k1, k2, k3, k4 = jax.random.split(key, 4)

    # NCHW-shaped logits & targets, as a detection head would produce.
    x = jax.random.normal(k1, (2, 4, 16, 16), dtype=jnp.float32)          # pred
    t = (jax.random.uniform(k2, (2, 4, 16, 16)) > 0.5).astype(jnp.float32)  # true

    out = jax.block_until_ready(bce_blur_with_logits_loss(x, t))
    ref = _reference(x, t)
    assert jnp.allclose(out, ref, atol=1e-5, rtol=1e-5), (out, ref)

    # Extra small-shape checks: multi-step / two-shard grid (clamped phantom step),
    # partial edge block, and the ragged-tail epilogue path.
    x2 = jax.random.normal(k3, (3172,), dtype=jnp.float32)   # 3072 kernel + 100 tail
    t2 = (jax.random.uniform(k4, (3172,)) > 0.5).astype(jnp.float32)
    for mtr in (8, 16):
        out2 = jax.block_until_ready(
            bce_blur_with_logits_loss(x2, t2, max_tile_rows=mtr))
        ref2 = _reference(x2, t2)
        assert jnp.allclose(out2, ref2, atol=1e-5, rtol=1e-5), (mtr, out2, ref2)

    print("KERNEL_OK")
</pallas_src>

<mosaic_0001>
module attributes {stable_mosaic.version = 11 : i64} {
  func.func @_bce_blur_kernel(%arg0: i32, %arg1: i32, %arg2: memref<16x128xf32, #tpu.memory_space<vmem>>, %arg3: memref<16x128xf32, #tpu.memory_space<vmem>>, %arg4: memref<1x8x128xf32, #tpu.memory_space<vmem>>, %arg5: memref<8x128xf32, #tpu.memory_space<vmem>>) attributes {dimension_semantics = [#tpu.dimension_semantics<parallel>, #tpu.dimension_semantics<arbitrary>], iteration_bounds = array<i64: 1, 1>, scalar_prefetch = 0 : i64, scratch_operands = 1 : i64, tpu.core_type = #tpu.core_type<tc>, window_params = [{transform_indices = @transform_0, window_bounds = array<i64: 16, 128>}, {transform_indices = @transform_1, window_bounds = array<i64: 16, 128>}, {transform_indices = @transform_2, window_bounds = array<i64: 1, 8, 128>}]} {
    %c0_i32 = arith.constant 0 : i32
    %0 = arith.cmpi eq, %arg1, %c0_i32 : i32
    %1 = arith.extui %0 : i1 to i32
    %c0_i32_0 = arith.constant 0 : i32
    %2 = arith.cmpi ne, %1, %c0_i32_0 : i32
    scf.if %2 {
      %cst_17 = arith.constant 0.000000e+00 : f32
      %44 = vector.broadcast %cst_17 : f32 to vector<8x128xf32>
      %c0_18 = arith.constant 0 : index
      %c0_19 = arith.constant 0 : index
      %45 = vector.load %arg5[%c0_18, %c0_19] : memref<8x128xf32, #tpu.memory_space<vmem>>, vector<8x128xf32>
      tpu.vector_store %arg5[%c0_18, %c0_19], %44 {strides = array<i32>} : memref<8x128xf32, #tpu.memory_space<vmem>>, vector<8x128xf32>,
    } else {
    }
    %c0 = arith.constant 0 : index
    %c0_1 = arith.constant 0 : index
    %3 = vector.load %arg2[%c0, %c0_1] : memref<16x128xf32, #tpu.memory_space<vmem>>, vector<16x128xf32>
    %c0_2 = arith.constant 0 : index
    %c0_3 = arith.constant 0 : index
    %4 = vector.load %arg3[%c0_2, %c0_3] : memref<16x128xf32, #tpu.memory_space<vmem>>, vector<16x128xf32>
    %5 = math.absf %3 : vector<16x128xf32>
    %cst = arith.constant 0.000000e+00 : f32
    %6 = vector.broadcast %cst : f32 to vector<16x128xf32>
    %7 = arith.subf %6, %5 : vector<16x128xf32>
    %8 = math.exp %7 : vector<16x128xf32>
    %cst_4 = arith.constant 0.000000e+00 : f32
    %9 = vector.broadcast %cst_4 : f32 to vector<16x128xf32>
    %10 = arith.maximumf %3, %9 : vector<16x128xf32>
    %11 = arith.mulf %3, %4 : vector<16x128xf32>
    %12 = arith.subf %10, %11 : vector<16x128xf32>
    %13 = math.log1p %8 : vector<16x128xf32>
    %14 = arith.addf %12, %13 : vector<16x128xf32>
    %cst_5 = arith.constant 5.000000e-01 : f32
    %15 = vector.broadcast %cst_5 : f32 to vector<16x128xf32>
    %16 = arith.mulf %15, %3 : vector<16x128xf32>
    %17 = math.tanh %16 : vector<16x128xf32>
    %cst_6 = arith.constant 5.000000e-01 : f32
    %18 = vector.broadcast %cst_6 : f32 to vector<16x128xf32>
    %19 = arith.mulf %18, %17 : vector<16x128xf32>
    %cst_7 = arith.constant 5.000000e-01 : f32
    %20 = vector.broadcast %cst_7 : f32 to vector<16x128xf32>
    %21 = arith.addf %20, %19 : vector<16x128xf32>
    %22 = arith.subf %21, %4 : vector<16x128xf32>
    %cst_8 = arith.constant 1.000000e+00 : f32
    %23 = vector.broadcast %cst_8 : f32 to vector<16x128xf32>
    %24 = arith.subf %22, %23 : vector<16x128xf32>
    %cst_9 = arith.constant 5.010000e-02 : f32
    %25 = vector.broadcast %cst_9 : f32 to vector<16x128xf32>
    %26 = arith.divf %24, %25 : vector<16x128xf32>
    %27 = math.exp %26 : vector<16x128xf32>
    %cst_10 = arith.constant 1.000000e+00 : f32
    %28 = vector.broadcast %cst_10 : f32 to vector<16x128xf32>
    %29 = arith.subf %28, %27 : vector<16x128xf32>
    %30 = arith.mulf %14, %29 : vector<16x128xf32>
    %c1_i32 = arith.constant 1 : i32
    %31 = arith.muli %arg0, %c1_i32 : i32
    %32 = arith.addi %31, %arg1 : i32
    %c16_i32 = arith.constant 16 : i32
    %33 = arith.muli %32, %c16_i32 : i32
    %c16_i32_11 = arith.constant 16 : i32
    %34 = arith.addi %33, %c16_i32_11 : i32
    %c16_i32_12 = arith.constant 16 : i32
    %35 = arith.cmpi sle, %34, %c16_i32_12 : i32
    %36 = arith.extui %35 : i1 to i32
    %c0_i32_13 = arith.constant 0 : i32
    %37 = arith.cmpi ne, %36, %c0_i32_13 : i32
    scf.if %37 {
      %c0_17 = arith.constant 0 : index
      %c0_18 = arith.constant 0 : index
      %44 = vector.load %arg5[%c0_17, %c0_18] : memref<8x128xf32, #tpu.memory_space<vmem>>, vector<8x128xf32>
      %45 = vector.shape_cast %30 : vector<16x128xf32> to vector<2x8x128xf32>
      %cst_19 = arith.constant dense<0.000000e+00> : vector<8x128xf32>
      %46 = vector.multi_reduction <add>, %45, %cst_19 [0] : vector<2x8x128xf32> to vector<8x128xf32>
      %47 = arith.addf %44, %46 : vector<8x128xf32>
      %c0_20 = arith.constant 0 : index
      %c0_21 = arith.constant 0 : index
      %48 = vector.load %arg5[%c0_20, %c0_21] : memref<8x128xf32, #tpu.memory_space<vmem>>, vector<8x128xf32>
      tpu.vector_store %arg5[%c0_20, %c0_21], %47 {strides = array<i32>} : memref<8x128xf32, #tpu.memory_space<vmem>>, vector<8x128xf32>,
    } else {
    }
    %true = arith.constant true
    %38 = arith.xori %35, %true : i1
    %39 = arith.extui %38 : i1 to i32
    %c0_i32_14 = arith.constant 0 : i32
    %40 = arith.cmpi ne, %39, %c0_i32_14 : i32
    scf.if %40 {
      %44 = tpu.iota {dimensions = array<i32: 0>} : vector<16x128xi32>
      %45 = vector.broadcast %33 : i32 to vector<16x128xi32>
      %46 = arith.addi %45, %44 : vector<16x128xi32>
      %c16_i32_17 = arith.constant 16 : i32
      %47 = vector.broadcast %c16_i32_17 : i32 to vector<16x128xi32>
      %48 = arith.cmpi slt, %46, %47 : vector<16x128xi32>
      %cst_18 = arith.constant 0.000000e+00 : f32
      %49 = vector.broadcast %cst_18 : f32 to vector<16x128xf32>
      %50 = arith.select %48, %30, %49 : vector<16x128xi1>, vector<16x128xf32>
      %c0_19 = arith.constant 0 : index
      %c0_20 = arith.constant 0 : index
      %51 = vector.load %arg5[%c0_19, %c0_20] : memref<8x128xf32, #tpu.memory_space<vmem>>, vector<8x128xf32>
      %52 = vector.shape_cast %50 : vector<16x128xf32> to vector<2x8x128xf32>
      %cst_21 = arith.constant dense<0.000000e+00> : vector<8x128xf32>
      %53 = vector.multi_reduction <add>, %52, %cst_21 [0] : vector<2x8x128xf32> to vector<8x128xf32>
      %54 = arith.addf %51, %53 : vector<8x128xf32>
      %c0_22 = arith.constant 0 : index
      %c0_23 = arith.constant 0 : index
      %55 = vector.load %arg5[%c0_22, %c0_23] : memref<8x128xf32, #tpu.memory_space<vmem>>, vector<8x128xf32>
      tpu.vector_store %arg5[%c0_22, %c0_23], %54 {strides = array<i32>} : memref<8x128xf32, #tpu.memory_space<vmem>>, vector<8x128xf32>,
    } else {
    }
    %c0_i32_15 = arith.constant 0 : i32
    %41 = arith.cmpi eq, %arg1, %c0_i32_15 : i32
    %42 = arith.extui %41 : i1 to i32
    %c0_i32_16 = arith.constant 0 : i32
    %43 = arith.cmpi ne, %42, %c0_i32_16 : i32
    scf.if %43 {
      %c0_17 = arith.constant 0 : index
      %c0_18 = arith.constant 0 : index
      %44 = vector.load %arg5[%c0_17, %c0_18] : memref<8x128xf32, #tpu.memory_space<vmem>>, vector<8x128xf32>
      %c0_19 = arith.constant 0 : index
      %c0_20 = arith.constant 0 : index
      %c0_21 = arith.constant 0 : index
      %45 = vector.load %arg4[%c0_19, %c0_20, %c0_21] : memref<1x8x128xf32, #tpu.memory_space<vmem>>, vector<1x8x128xf32>
      %46 = vector.shape_cast %45 : vector<1x8x128xf32> to vector<8x128xf32>
      %47 = vector.shape_cast %44 : vector<8x128xf32> to vector<1x8x128xf32>
      tpu.vector_store %arg4[%c0_19, %c0_20, %c0_21], %47 {strides = array<i32>} : memref<1x8x128xf32, #tpu.memory_space<vmem>>, vector<1x8x128xf32>,
    } else {
    }
    return
  }
  func.func @transform_0(%arg0: i32, %arg1: i32) -> (i32, i32) {
    %c1_i32 = arith.constant 1 : i32
    %0 = arith.muli %arg0, %c1_i32 : i32
    %1 = arith.addi %0, %arg1 : i32
    %c0_i32 = arith.constant 0 : i32
    %2 = arith.minsi %1, %c0_i32 : i32
    %c0_i32_0 = arith.constant 0 : i32
    %c0_i32_1 = arith.constant 0 : i32
    return %2, %c0_i32_0 : i32, i32
  }
  func.func @transform_1(%arg0: i32, %arg1: i32) -> (i32, i32) {
    %c1_i32 = arith.constant 1 : i32
    %0 = arith.muli %arg0, %c1_i32 : i32
    %1 = arith.addi %0, %arg1 : i32
    %c0_i32 = arith.constant 0 : i32
    %2 = arith.minsi %1, %c0_i32 : i32
    %c0_i32_0 = arith.constant 0 : i32
    %c0_i32_1 = arith.constant 0 : i32
    return %2, %c0_i32_0 : i32, i32
  }
  func.func @transform_2(%arg0: i32, %arg1: i32) -> (i32, i32, i32) {
    %c0_i32 = arith.constant 0 : i32
    %c0_i32_0 = arith.constant 0 : i32
    %c0_i32_1 = arith.constant 0 : i32
    return %arg0, %c0_i32, %c0_i32_0 : i32, i32, i32
  }
}

</mosaic_0001>

<bundles_post_ra>
// kernel: tpu_custom_call.1
= control target key start
LH: loop header
LB: loop body
LE: loop exit
PB: predicated region body
PF: predicated region fallthrough
CT: control target
= control target key end

     0   :  { %7 = vsyncpa [#allocation4], 0  ;;  %s298_s0 = inlined_call_operand.hbm [shape: f32[16,128], index: 0, kind: input, shape index: {}]   ;;  %s299_s1 = inlined_call_operand.hbm [shape: f32[16,128], index: 1, kind: input, shape index: {}]   ;;  %s300_s2 = inlined_call_operand.hbm [shape: f32[1,8,128], index: 2, kind: output, shape index: {}]  }
   0x1   :  { %8 = vsyncpa [#allocation7], 0 }
   0x2   :  { %9 = vsyncpa [#allocation5], 0  ;;  %s269_s9 = smov [#allocation3]  }
   0x3   :  { %s21_s10 = sshll.u32 %s269_s9, 4  ;;  %s22_s10 = int_to_ptr.vmem [resolvable:$true] %s21_s10 }
   0x4   :  { %s211_s11 = scalar_lea.vmem %s22_s10, 256  ;;  %p216_p1 = scmp.lt.s32.totalorder %s22_s10, %s22_s10 }
   0x5   :  { %p212_p0 = scmp.ne.s32.totalorder %s22_s10, %s211_s11  ;;  %p217_p2 = scmp.lt.s32.totalorder %s211_s11, %s211_s11 }
   0x7   :  { %p218_p3 = por %p217_p2, %p216_p1 }
   0x9   :  { %p219_p4 = pnand %p218_p3, %p212_p0 }
   0xb   :  { %222 = shalt.err (!%p219_p4)
}
   0xc   :  { %s270_s12 = smov 128   ;;  %s271_s13 = smov 8  }
   0xd   :  { %27 = dma.hbm_to_vmem [thread:$0]  %s298_s0, 256, %s22_s10, [#allocation4], %s270_s12, %s270_s12, %s271_s13  }
   0xe   :  { %s272_s16 = smov [#allocation6]  }
   0xf   :  { %s39_s17 = sshll.u32 %s272_s16, 4  ;;  %s40_s17 = int_to_ptr.vmem [resolvable:$true] %s39_s17 }
  0x10   :  { %s231_s18 = scalar_lea.vmem %s40_s17, 256  ;;  %p236_p6 = scmp.lt.s32.totalorder %s40_s17, %s40_s17 }
  0x11   :  { %p232_p5 = scmp.ne.s32.totalorder %s40_s17, %s231_s18  ;;  %p237_p7 = scmp.lt.s32.totalorder %s231_s18, %s231_s18 }
  0x13   :  { %p238_p8 = por %p237_p7, %p236_p6 }
  0x15   :  { %p239_p9 = pnand %p238_p8, %p232_p5 }
  0x17   :  { %242 = shalt.err (!%p239_p9)
}
  0x18   :  { %45 = dma.hbm_to_vmem [thread:$0]  %s299_s1, 256, %s40_s17, [#allocation7], %s270_s12, %s270_s12, %s271_s13  }
  0x19   :  { %263 = dma.done.wait [#allocation4], 256  }
  0x1a   :  { %264 = vsyncadd [#allocation4], 4294967040 }
  0x1b   :  { %265 = dma.done.wait [#allocation7], 256  }
  0x1c   :  { %266 = vsyncadd [#allocation7], 4294967040  ;;  %v65_v0 = vld [vmem:[#allocation3] sm:$0xff]  ;;  %v66_v1 = vld [vmem:[#allocation3 + $0x8] sm:$0xff]  ;;  %s273_s0 = smov [#allocation8]  }
  0x1d   :  { %v69_v2 = vand.u32 2147483647, %v65_v0  ;;  %v70_v3 = vand.u32 2147483647, %v66_v1  ;;  %v103_v4 = vmul.f32 0.5, %v65_v0  ;;  %v104_v5 = vmul.f32 0.5, %v66_v1 }
  0x1e   :  { %v67_v13 = vld [vmem:[#allocation6] sm:$0xff]  ;;  %v68_v16 = vld [vmem:[#allocation6 + $0x8] sm:$0xff]  ;;  %v77_v36 = vmax.f32 %v65_v0, 0.0  ;;  %v78_v38 = vmax.f32 %v66_v1, 0.0  ;;  %s166_s1 = sshll.u32 %s273_s0, 4  ;;  %s167_s1 = int_to_ptr.vmem [resolvable:$true] %s166_s1 }
  0x1f   :  { %v71_v6 = vsub.f32 0.0, %v69_v2  ;;  %v72_v7 = vsub.f32 0.0, %v70_v3  ;;  %187 = vtanh.f32 %v103_v4  ;;  %v79_v37 = vmul.f32 %v67_v13, %v65_v0  ;;  %s243_s21 = scalar_lea.vmem %s167_s1, 128  ;;  %p248_p11 = scmp.lt.s32.totalorder %s167_s1, %s167_s1 }
  0x20   :  { %189 = vtanh.f32 %v104_v5  ;;  %v80_v39 = vmul.f32 %v68_v16, %v66_v1  ;;  %p244_p10 = scmp.ne.s32.totalorder %s167_s1, %s243_s21  ;;  %p249_p12 = scmp.lt.s32.totalorder %s243_s21, %s243_s21 }
  0x21   :  { %v73_v8 = vmul.f32 1.442695, %v71_v6  ;;  %v75_v9 = vmul.f32 1.442695, %v72_v7  ;;  %v81_v45 = vsub.f32 %v77_v36, %v79_v37 }
  0x22   :  { %v82_v47 = vsub.f32 %v78_v38, %v80_v39  ;;  %p250_p13 = por %p249_p12, %p248_p11 }
  0x23   :  { %191 = vpow2.f32 %v73_v8 }
  0x24   :  { %193 = vpow2.f32 %v75_v9  ;;  %p251_p0 = pnand %p250_p13, %p244_p10 }
  0x2c   :  { %v188_v10 = vpop.eup %187 }
  0x2d   :  { %v190_v11 = vpop.eup %189  ;;  %v107_v12 = vmul.f32 0.5, %v188_v10 }
  0x2e   :  { %v108_v14 = vmul.f32 0.5, %v190_v11 }
  0x2f   :  { %v109_v17 = vadd.f32 0.5, %v107_v12 }
  0x30   :  { %v192_v15 = vpop.eup %191  ;;  %v110_v20 = vadd.f32 0.5, %v108_v14 }
  0x31   :  { %v194_v18 = vpop.eup %193  ;;  %v83_v19 = vadd.f32 1.0, %v192_v15  ;;  %v111_v22 = vsub.f32 %v109_v17, %v67_v13  ;;  %v86_v27 = vmul.f32 -0.5, %v192_v15  ;;  %v89_v33 = vand.u32 2147483647, %v192_v15 }
  0x32   :  { %v92_v21 = vadd.f32 1.0, %v194_v18  ;;  %v112_v23 = vsub.f32 %v110_v20, %v68_v16  ;;  %v95_v29 = vmul.f32 -0.5, %v194_v18  ;;  %v98_v35 = vand.u32 2147483647, %v194_v18 }
  0x33   :  { %195 = vlog2.f32 %v83_v19  ;;  %v180_v24 = vadd.f32 -1.0, %v111_v22  ;;  %v87_v32 = vadd.f32 1.0, %v86_v27  ;;  %vm90_vm0 = vcmp.lt.f32.partialorder %v89_v33, 0.0004427343 }
  0x34   :  { %197 = vlog2.f32 %v92_v21  ;;  %v181_v25 = vadd.f32 -1.0, %v112_v23  ;;  %v96_v34 = vadd.f32 1.0, %v95_v29  ;;  %vm99_vm1 = vcmp.lt.f32.partialorder %v98_v35, 0.0004427343 }
  0x35   :  { %v116_v26 = vmul.f32 19.960081, %v180_v24  ;;  %v88_v40 = vmul.f32 %v192_v15, %v87_v32 }
  0x36   :  { %v117_v28 = vmul.f32 19.960081, %v181_v25  ;;  %v97_v42 = vmul.f32 %v194_v18, %v96_v34 }
  0x37   :  { %v118_v30 = vmul.f32 1.442695, %v116_v26 }
  0x38   :  { %v120_v31 = vmul.f32 1.442695, %v117_v28 }
  0x39   :  { %199 = vpow2.f32 %v118_v30 }
  0x3a   :  { %201 = vpow2.f32 %v120_v31 }
  0x40   :  { %v196_v41 = vpop.eup %195 }
  0x41   :  { %v198_v43 = vpop.eup %197  ;;  %v85_v44 = vmul.f32 0.6931472, %v196_v41 }
  0x42   :  { %v94_v46 = vmul.f32 0.6931472, %v198_v43 }
  0x43   :  { %v91_v48 = vsel %vm90_vm0, %v88_v40, %v85_v44 }
  0x44   :  { %v100_v49 = vsel %vm99_vm1, %v97_v42, %v94_v46  ;;  %v101_v50 = vadd.f32 %v91_v48, %v81_v45 }
  0x45   :  { %v102_v52 = vadd.f32 %v100_v49, %v82_v47 }
  0x46   :  { %v200_v51 = vpop.eup %199 }
  0x47   :  { %v202_v53 = vpop.eup %201  ;;  %v122_v54 = vsub.f32 1.0, %v200_v51 }
  0x48   :  { %v123_v55 = vsub.f32 1.0, %v202_v53 }
  0x49   :  { %v124_v56 = vmul.f32 %v122_v54, %v101_v50 }
  0x4a   :  { %v125_v57 = vmul.f32 %v123_v55, %v102_v52 }
  0x4c   :  { %v134_v58 = vadd.f32 %v125_v57, %v124_v56 }
  0x4e   :  { %159 = vst [vmem:[#allocation8] sm:$0xff] %v134_v58 }
  0x4f   :  { %254 = shalt.err (!%p251_p0)
}
  0x50   :  { %169 = dma.vmem_to_hbm [thread:$0]  %s167_s1, 128, %s300_s2, [#allocation5]  }
  0x51   :  { %267 = dma.done.wait [#allocation5], 128  }
  0x52   :  { %268 = vsyncadd [#allocation5], 4294967168 }
  0x53   :  { %173 = vsyncpa [#allocation4], 1 }
  0x54   :  { %174 = vsyncpa [#allocation7], 1 }
  0x55   :  { %175 = vsyncpa [#allocation5], 1 }

</bundles_post_ra>
